<compile_context>
chip_gen: v7x
topology: tpu7x:2x2x1
jax: 0.10.0
libtpu: 0.0.40
codegen_flags: <defaults>
</compile_context>

<pallas_src>
import jax
import jax.numpy as jnp
from jax import lax
from jax.experimental import pallas as pl
from jax.experimental.pallas import tpu as pltpu


def _model1_kernel(x1_ref, x2_ref, out_ref):
    # x1_ref, x2_ref: (Bt, M, N) VMEM tiles for the current batch block.
    x1 = x1_ref[...]  # (Bt, M, N)
    x2 = x2_ref[...]  # (Bt, M, N)

    # w = v2^T = x2^T @ x1 : w[b, k, n] = sum_m x2[b, m, k] * x1[b, m, n]
    #   (x1 used in standard rhs orientation; only x2 is in A^T-B form)
    w = lax.dot_general(
        x2, x1,
        dimension_numbers=(((1,), (1,)), ((0,), (0,))),
        preferred_element_type=jnp.float32,
    )  # (Bt, N, N)

    # v3^T = x1 @ v2^T : v3t[b, m, n] = sum_k x1[b, m, k] * w[b, k, n]
    #   (standard matmul form, no transpose needed; output is lane-dense in N)
    v3t = lax.dot_general(
        x1, w,
        dimension_numbers=(((2,), (1,)), ((0,), (0,))),
        preferred_element_type=jnp.float32,
    )  # (Bt, M, N)

    out_ref[...] = v3t.astype(out_ref.dtype)


def _choose_bt(BC, M, N, budget_bytes=12 * 1024 * 1024, cap=128):
    """Pick the largest batch-block size Bt that divides BC and fits VMEM.

    Keeps >= 2 grid steps when BC >= 2 so a parallel batch axis can use both
    TensorCores on v7x; budget is conservative so it also fits v5e's 16 MiB
    scoped-VMEM default and v7x's 64 MiB physical VMEM.
    """
    hard_cap = min(cap, BC if BC < 2 else max(1, BC // 2))
    best = 1
    for bt in range(1, hard_cap + 1):
        if BC % bt:
            continue
        per_block = 4 * bt * (
            2 * 2 * M * N      # two f32 inputs, double-buffered
            + 2 * M * N        # f32 output, double-buffered
            + N * N            # (N, N) f32 intermediate per batch element
        )
        if per_block <= budget_bytes:
            best = bt
    return best


def model1_forward(x1, x2):
    """x1, x2: (B, C, M, N) float32. Returns (B, C, N, M)."""
    B, C, M, N = x1.shape
    assert x2.shape == (B, C, M, N)
    BC = B * C

    x1f = x1.reshape(BC, M, N)
    x2f = x2.reshape(BC, M, N)

    bt = _choose_bt(BC, M, N)
    grid = (BC // bt,)

    # Two batched matmuls: (N x M x N) and (M x N x N) MACs per element.
    flops = 4 * BC * M * N * N
    bytes_accessed = 4 * (2 * BC * M * N + BC * M * N)

    v3t = pl.pallas_call(
        _model1_kernel,
        out_shape=jax.ShapeDtypeStruct((BC, M, N), x1.dtype),
        grid_spec=pltpu.PrefetchScalarGridSpec(
            num_scalar_prefetch=0,
            grid=grid,
            in_specs=[
                pl.BlockSpec((bt, M, N), lambda b: (b, 0, 0)),
                pl.BlockSpec((bt, M, N), lambda b: (b, 0, 0)),
            ],
            out_specs=pl.BlockSpec((bt, M, N), lambda b: (b, 0, 0)),
        ),
        compiler_params=pltpu.CompilerParams(
            dimension_semantics=("parallel",),
        ),
        cost_estimate=pl.CostEstimate(
            flops=flops,
            transcendentals=0,
            bytes_accessed=bytes_accessed,
        ),
    )(x1f, x2f)

    # Kernel produced v3^T (lane-dense in N); one cheap XLA transpose here.
    return jnp.swapaxes(v3t.reshape(B, C, M, N), -1, -2)


def model1_reference(x1, x2):
    v1 = jnp.swapaxes(x1, -1, -2)       # permute(0, 1, 3, 2)
    v2 = jnp.matmul(v1, x2)             # batched matmul
    v3 = jnp.matmul(v2, v1)
    return v3


if __name__ == "__main__":
    key = jax.random.PRNGKey(0)
    k1, k2 = jax.random.split(key)

    # Small shapes consistent with the module's (B, C, M, N) inputs.
    B, C, M, N = 2, 4, 8, 16
    x1 = jax.random.normal(k1, (B, C, M, N), dtype=jnp.float32)
    x2 = jax.random.normal(k2, (B, C, M, N), dtype=jnp.float32)

    out = model1_forward(x1, x2)
    out = jax.block_until_ready(out)

    ref = model1_reference(x1, x2)
    assert out.shape == ref.shape == (B, C, N, M)
    assert jnp.allclose(out, ref, atol=1e-4, rtol=1e-4)

    print("KERNEL_OK")
</pallas_src>

<mosaic_0001>
module attributes {stable_mosaic.version = 11 : i64} {
  func.func @_model1_kernel(%arg0: i32, %arg1: memref<4x8x16xf32, #tpu.memory_space<vmem>>, %arg2: memref<4x8x16xf32, #tpu.memory_space<vmem>>, %arg3: memref<4x8x16xf32, #tpu.memory_space<vmem>>) attributes {dimension_semantics = [#tpu.dimension_semantics<parallel>], iteration_bounds = array<i64: 2>, scalar_prefetch = 0 : i64, scratch_operands = 0 : i64, tpu.core_type = #tpu.core_type<tc>, window_params = [{transform_indices = @transform_0, window_bounds = array<i64: 4, 8, 16>}, {transform_indices = @transform_1, window_bounds = array<i64: 4, 8, 16>}, {transform_indices = @transform_2, window_bounds = array<i64: 4, 8, 16>}]} {
    %c0 = arith.constant 0 : index
    %c0_0 = arith.constant 0 : index
    %c0_1 = arith.constant 0 : index
    %0 = vector.load %arg1[%c0, %c0_0, %c0_1] : memref<4x8x16xf32, #tpu.memory_space<vmem>>, vector<4x8x16xf32>
    %c0_2 = arith.constant 0 : index
    %c0_3 = arith.constant 0 : index
    %c0_4 = arith.constant 0 : index
    %1 = vector.load %arg2[%c0_2, %c0_3, %c0_4] : memref<4x8x16xf32, #tpu.memory_space<vmem>>, vector<4x8x16xf32>
    %cst = arith.constant dense<0.000000e+00> : vector<4x16x16xf32>
    %2 = tpu.matmul %1, %0, %cst {dimension_numbers = #tpu.dot_dimension_numbers<[1], [1], [2], [2], [0, 0, 0, 2, 1, 2], [0], [0]>} : vector<4x8x16xf32>, vector<4x8x16xf32>, vector<4x16x16xf32> -> vector<4x16x16xf32>
    %cst_5 = arith.constant dense<0.000000e+00> : vector<4x8x16xf32>
    %3 = tpu.matmul %0, %2, %cst_5 {dimension_numbers = #tpu.dot_dimension_numbers<[2], [1], [1], [2], [0, 0, 0, 1, 1, 2], [0], [0]>} : vector<4x8x16xf32>, vector<4x16x16xf32>, vector<4x8x16xf32> -> vector<4x8x16xf32>
    %c0_6 = arith.constant 0 : index
    %c0_7 = arith.constant 0 : index
    %c0_8 = arith.constant 0 : index
    %4 = vector.load %arg3[%c0_6, %c0_7, %c0_8] : memref<4x8x16xf32, #tpu.memory_space<vmem>>, vector<4x8x16xf32>
    tpu.vector_store %arg3[%c0_6, %c0_7, %c0_8], %3 {strides = array<i32>} : memref<4x8x16xf32, #tpu.memory_space<vmem>>, vector<4x8x16xf32>,
    return
  }
  func.func @transform_0(%arg0: i32) -> (i32, i32, i32) {
    %c0_i32 = arith.constant 0 : i32
    %c0_i32_0 = arith.constant 0 : i32
    %c0_i32_1 = arith.constant 0 : i32
    return %arg0, %c0_i32, %c0_i32_0 : i32, i32, i32
  }
  func.func @transform_1(%arg0: i32) -> (i32, i32, i32) {
    %c0_i32 = arith.constant 0 : i32
    %c0_i32_0 = arith.constant 0 : i32
    %c0_i32_1 = arith.constant 0 : i32
    return %arg0, %c0_i32, %c0_i32_0 : i32, i32, i32
  }
  func.func @transform_2(%arg0: i32) -> (i32, i32, i32) {
    %c0_i32 = arith.constant 0 : i32
    %c0_i32_0 = arith.constant 0 : i32
    %c0_i32_1 = arith.constant 0 : i32
    return %arg0, %c0_i32, %c0_i32_0 : i32, i32, i32
  }
}

</mosaic_0001>

<bundles_post_ra>
// kernel: tpu_custom_call.1
= control target key start
LH: loop header
LB: loop body
LE: loop exit
PB: predicated region body
PF: predicated region fallthrough
CT: control target
= control target key end

     0   :  { %7 = vsyncpa [#allocation3], 0  ;;  %s1653_s0 = inlined_call_operand.hbm [shape: f32[8,8,16], index: 0, kind: input, shape index: {}]   ;;  %s1654_s1 = inlined_call_operand.hbm [shape: f32[8,8,16], index: 1, kind: input, shape index: {}]   ;;  %s1655_s2 = inlined_call_operand.hbm [shape: f32[8,8,16], index: 2, kind: output, shape index: {}]  }
   0x1   :  { %9 = vsyncpa [#allocation3 + $0x1], 0 }
   0x2   :  { %10 = vsyncpa [#allocation6], 0 }
   0x3   :  { %12 = vsyncpa [#allocation6 + $0x1], 0 }
   0x4   :  { %13 = vsyncpa [#allocation4], 0 }
   0x5   :  { %15 = vsyncpa [#allocation4 + $0x1], 0  ;;  %s1405_s9 = smov 0   ;;  %s1407_s10 = smov 0  }
   0x6   :  { %s1409_s11 = smov 0   ;;  %s1411_s12 = smov 0  }
   0x7 LB: > { %s1426_s13 = sadd.s32 4294967295, %s1378_s12   ;;  %s1073_s14 = sadd.s32 4294967294, %s1378_s12   ;;  %s1378_s12 = sphi %s1411_s12, %s1671_s12   ;;  %s1374_s11 = sphi %s1409_s11, %s1670_s11   ;;  %s1370_s10 = sphi %s1407_s10, %s1669_s10   ;;  %s1366_s9 = sphi %s1405_s9, %s1668_s9  }
   0x8   : > { %s1430_s15 = sadd.s32 1, %s1378_s12   ;;  %s28_s16 = sadd.s32 1, %s1374_s11 }
   0x9   : > { %s25_s17 = ssub.s32 %s1378_s12, %s1430_s15  ;;  %p35_p0 = scmp.ne.s32.totalorder %s1374_s11, %s1370_s10 }
   0xa   : > { %p26_p1 = scmp.eq.s32.totalorder %s25_s17, 0  ;;  %p36_p2 = scmp.eq.s32.totalorder %s1378_s12, 0 }
   0xb   : > { %p41_p3 = scmp.ne.s32.totalorder %s1370_s10, %s1366_s9  ;;  %p42_p4 = scmp.eq.s32.totalorder %s1426_s13, 0 }
   0xc   : > { %s1442_s18 = scalar_select %p26_p1, %s1374_s11, %s28_s16  }
   0xd   : > { %p1444_p5 = por %p36_p2, %p35_p0  ;;  %p1448_p6 = por %p42_p4, %p41_p3 }
   0xe   : > { %p91_p7 = scmp.eq.s32.totalorder %s1426_s13, 1  ;;  %p97_p8 = scmp.eq.s32.totalorder %s1073_s14, 1 }
   0xf   : > { %s1659_s20 = scalar_select %p1448_p6, 1, 0 }
  0x10   : > { %p1207_p10 = scmp.lt.s32.totalorder %s1378_s12, 2  ;;  %p1455_p11 = por %p91_p7, %p35_p0 }
  0x11   : > { %p1459_p12 = por %p97_p8, %p41_p3  ;;  %s1464_s23 = sand.u32 1, %s1374_s11  }
  0x12   : > { %s1660_s21 = scalar_select %p1455_p11, 1, 0 }
  0x13   : > { %s1661_s22 = scalar_select %p1459_p12, 1, 0 }
  0x14   : > { %s1103_s24 = sshll.u32 %s1378_s12, 9  ;;  %s1076_s25 = sshll.u32 %s1464_s23, 5 }
  0x15   : > { %s1473_s28 = scalar_lea.hbm %s1653_s0, %s1103_s24  ;;  %s121_s29 = scalar_lea.vmem [#allocation2], %s1076_s25 }
  0x16   : > { %s128_s30 = sshll.u32 %s121_s29, 4  ;;  %p1479_p13 = pnand %p1207_p10, %p1444_p5  ;;  %s1483_s30 = int_to_ptr.vmem [resolvable:$true] %s128_s30 }
  0x17   : > { %s118_s4 = scalar_lea.sflag [#allocation3], %s1464_s23  ;;  %s1248_s5 = scalar_lea.hbm %s1473_s28, 512 }
  0x18   : > { %p1249_p0 = scmp.ne.s32.totalorder %s1473_s28, %s1248_s5  ;;  %p1250_p1 = pneg %p1479_p13 }
  0x19   : > { %s1253_s8 = scalar_lea.hbm %s1653_s0, 1024  ;;  %p1254_p4 = scmp.lt.u32.totalorder %s1473_s28, %s1653_s0 }
  0x1a   : > { %p1251_p2 = pnand %p1250_p1, %p1249_p0  ;;  %p1255_p5 = scmp.lt.u32.totalorder %s1253_s8, %s1248_s5 }
  0x1b   : > { %p1257_p8 = scmp.lt.u32.totalorder %s1248_s5, %s1473_s28 }
  0x1c   : > { %p1252_p3 = pneg %p1251_p2  ;;  %p1256_p7 = por %p1255_p5, %p1254_p4 }
  0x1e   : > { %p1258_p10 = por %p1257_p8, %p1256_p7 }
  0x20   : > { %p1259_p9 = pnand %p1258_p10, %p1252_p3 }
  0x22   : > { %1262 = shalt.err (!%p1259_p9)
}
  0x23   : > { %s1263_s17 = scalar_lea.vmem %s1483_s30, 512  ;;  %s1380_s19 = smov [#allocation2]  }
  0x24   : > { %p1264_p0 = scmp.ne.s32.totalorder %s1483_s30, %s1263_s17  ;;  %s1268_s26 = sshll.u32 %s1380_s19, 4  ;;  %s1269_s26 = int_to_ptr.vmem [resolvable:$false] %s1268_s26 }
  0x25   : > { %s1270_s27 = scalar_lea.vmem %s1269_s26, 1024  ;;  %p1271_p11 = scmp.lt.s32.totalorder %s1483_s30, %s1269_s26 }
  0x26   : > { %p1266_p2 = pnand %p1264_p0, %p1250_p1  ;;  %p1272_p4 = scmp.lt.s32.totalorder %s1270_s27, %s1263_s17 }
  0x28   : > { %p1267_p12 = pneg %p1266_p2  ;;  %p1273_p5 = por %p1272_p4, %p1271_p11 }
  0x2a   : > { %p1274_p7 = pnand %p1273_p5, %p1267_p12 }
  0x2c   : > { %1277 = shalt.err (!%p1274_p7)
}
  0x2d   : > { %s1381_s29 = smov 128   ;;  %s1382_s5 = smov 8  }
  0x2e   : > { %1199 = dma.hbm_to_vmem [thread:$0]  (!%p1479_p13), %s1473_s28, 512, %s1483_s30, %s118_s4, %s1381_s29, %s1381_s29, %s1382_s5  }
  0x2f   : > { %p1082_p9 = scmp.ge.s32.totalorder %s1378_s12, 1  ;;  %p157_p11 = scmp.lt.s32.totalorder %s1378_s12, 3 }
  0x30   : > { %s1527_s14 = scalar_lea.hbm %s1654_s1, %s1103_s24  ;;  %s142_s16 = scalar_lea.vmem [#allocation5], %s1076_s25 }
  0x31   : > { %p1518_p12 = pnand %p1082_p9, %p157_p11  ;;  %s149_s17 = sshll.u32 %s142_s16, 4  ;;  %s1531_s17 = int_to_ptr.vmem [resolvable:$true] %s149_s17 }
  0x32   : > { %s139_s28 = scalar_lea.sflag [#allocation6], %s1464_s23  ;;  %s1278_s30 = scalar_lea.hbm %s1527_s14, 512 }
  0x33   : > { %p1279_p3 = scmp.ne.s32.totalorder %s1527_s14, %s1278_s30  ;;  %s1283_s24 = scalar_lea.hbm %s1654_s1, 1024 }
  0x34   : > { %p1284_p0 = scmp.lt.u32.totalorder %s1527_s14, %s1654_s1  ;;  %p1285_p2 = scmp.lt.u32.totalorder %s1283_s24, %s1278_s30 }
  0x35   : > { %p1281_p8 = pnand %p1279_p3, %p1250_p1  ;;  %p1287_p5 = scmp.lt.u32.totalorder %s1278_s30, %s1527_s14 }
  0x36   : > { %p1286_p4 = por %p1285_p2, %p1284_p0 }
  0x37   : > { %p1282_p10 = pneg %p1281_p8 }
  0x38   : > { %p1288_p7 = por %p1287_p5, %p1286_p4 }
  0x3a   : > { %p1289_p9 = pnand %p1288_p7, %p1282_p10 }
  0x3c   : > { %1292 = shalt.err (!%p1289_p9)
}
  0x3d   : > { %s1293_s25 = scalar_lea.vmem %s1531_s17, 512  ;;  %s1383_s7 = smov [#allocation5]  }
  0x3e   : > { %p1294_p11 = scmp.ne.s32.totalorder %s1531_s17, %s1293_s25  ;;  %s1298_s8 = sshll.u32 %s1383_s7, 4  ;;  %s1299_s8 = int_to_ptr.vmem [resolvable:$false] %s1298_s8 }
  0x3f   : > { %s1300_s16 = scalar_lea.vmem %s1299_s8, 1024  ;;  %p1301_p6 = scmp.lt.s32.totalorder %s1531_s17, %s1299_s8 }
  0x40   : > { %p1296_p3 = pnand %p1294_p11, %p1250_p1  ;;  %p1302_p0 = scmp.lt.s32.totalorder %s1300_s16, %s1293_s25 }
  0x42   : > { %p1297_p8 = pneg %p1296_p3  ;;  %p1303_p2 = por %p1302_p0, %p1301_p6 }
  0x44   : > { %p1304_p4 = pnand %p1303_p2, %p1297_p8 }
  0x46   : > { %1307 = shalt.err (!%p1304_p4)
}
  0x47   : > { %1202 = dma.hbm_to_vmem [thread:$0]  (!%p1479_p13), %s1527_s14, 512, %s1531_s17, %s139_s28, %s1381_s29, %s1381_s29, %s1382_s5  }
  0x48   : > { %161 = sbr.rel (%p1518_p12) target bundleno = 673 (0x2a1), region = 28  ;;  %s1565_s30 = sand.u32 (!%p1518_p12), 1, %s1370_s10  }
  0x49   : > { %s1568_s4 = sshll.u32 (!%p1518_p12), %s1565_s30, 5  ;;  %s164_s3 = scalar_lea.sflag (!%p1518_p12), [#allocation3], %s1565_s30 }
  0x4a   : > { %s167_s19 = scalar_lea.vmem (!%p1518_p12), [#allocation2], %s1568_s4  ;;  %p1664_p6 = scmp.ne.s32.totalorder (!%p1518_p12), %s1659_s20, 0 }
  0x4f   : > { %1353 = dma.done.wait (%p1664_p6), %s164_s3, 512  }
  0x50   : > { %1355 = vsyncadd (%p1664_p6), %s164_s3, 4294966784  ;;  %s173_s23 = scalar_lea.sflag [#allocation6], %s1565_s30  ;;  %s176_s29 = scalar_lea.vmem [#allocation5], %s1568_s4 }
  0x51   : > { %1357 = dma.done.wait (%p1664_p6), %s173_s23, 512  }
  0x52   : > { %1359 = vsyncadd (%p1664_p6), %s173_s23, 4294966784  ;;  %v209_v0 = vld [vmem:[%s176_s29] sm:$0xff]  ;;  %v211_v1 = vld [vmem:[%s176_s29 + $0x10] sm:$0xff]  ;;  %vm245_vm0 = vcmask 64512   ;;  %v1384_v16 = vmov 0.0|0.0   ;;  %vm1385_vm1 = vmmov 0  }
  0x53   : > { %213 = vxpose.xlu0.b32.start.end [1/1] (short) (narrow) %v209_v0, 16  ;;  %440 = vxpose.xlu1.b32.start.end [1/1] (short) (narrow) %v211_v1, 16  ;;  %v205_v2 = vld [vmem:[%s167_s19] sm:$0xff]  ;;  %v210_v3 = vld [vmem:[%s176_s29 + $0x8] sm:$0xff]  ;;  %v212_v4 = vld [vmem:[%s176_s29 + $0x18] sm:$0xff]  ;;  %v1386_v17 = vmov 0.0  }
  0x54   : > { %1130 = vmatprep.subr.mxu0 %v205_v2  ;;  %v207_v5 = vld [vmem:[%s167_s19 + $0x10] sm:$0xff]  ;;  %v206_v6 = vld [vmem:[%s167_s19 + $0x8] sm:$0xff]  ;;  %v208_v7 = vld [vmem:[%s167_s19 + $0x18] sm:$0xff]  ;;  %vm666_vm2 = vcmask 130048   ;;  %s201_s20 = scalar_lea.vmem [#allocation7], %s1568_s4  ;;  %s1105_s6 = sshll.u32 %s1426_s13, 9 }
  0x55   : > { %1131 = vmatpush3.msra.mxu0 %v205_v2  ;;  %1135 = vmatprep.subr.mxu1 %v206_v6  ;;  %s977_s5 = sshll.u32 %s201_s20, 4  ;;  %s1608_s28 = scalar_lea.hbm %s1655_s2, %s1105_s6  ;;  %s1602_s5 = int_to_ptr.vmem [resolvable:$true] %s977_s5 }
  0x56   : > { %1140 = vmatprep.subr.mxu0 %v207_v5  ;;  %1136 = vmatpush3.msra.mxu1 %v206_v6  ;;  %s964_s24 = scalar_lea.sflag [#allocation4], %s1565_s30  ;;  %s1308_s13 = scalar_lea.vmem %s1602_s5, 512 }
  0x57   : > { %1145 = vmatprep.subr.mxu1 %v208_v7  ;;  %p1309_p13 = scmp.ne.s32.totalorder %s1602_s5, %s1308_s13  ;;  %p1665_p1 = scmp.ne.s32.totalorder %s1660_s21, 0 }
  0x58   : > { %327 = vxpose.xlu0.b32.start.end [1/1] (short) (narrow) %v210_v3, 16  ;;  %553 = vxpose.xlu1.b32.start.end [1/1] (short) (narrow) %v212_v4, 16  ;;  %s1387_s26 = smov [#allocation7]  }
  0x59   : > { %p1310_p12 = pnand %p1309_p13, %p1665_p1  ;;  %s1312_s27 = sshll.u32 %s1387_s26, 4  ;;  %s1313_s27 = int_to_ptr.vmem [resolvable:$false] %s1312_s27 }
  0x5a   : > { %s1314_s25 = scalar_lea.vmem %s1313_s27, 1024  ;;  %p1315_p5 = scmp.lt.s32.totalorder %s1602_s5, %s1313_s27 }
  0x5b   : > { %p1311_p10 = pneg %p1310_p12  ;;  %p1316_p7 = scmp.lt.s32.totalorder %s1314_s25, %s1308_s13 }
  0x5d   : > { %p1317_p9 = por %p1316_p7, %p1315_p5 }
  0x5f   : > { %p1318_p11 = pnand %p1317_p9, %p1311_p10 }
  0xd3   : > { %v229_v8 = vpop.trf.xlu0  ;;  %v456_v9 = vpop.trf.xlu1 }
  0xd4   : > { %1132 = vmatprep.mubr.msk.f32.mxu0 %vm245_vm0, %v229_v8 }
  0xd7   : > { %v230_v10 = vpop.trf.xlu0  ;;  %v457_v11 = vpop.trf.xlu1 }
  0xd8   : > { %1133 = vmatmul.mubr.msk.f32.vlgmr.msra.gmra.mrb[0].mxu0 %vm245_vm0, %v230_v10 }
  0xd9   : > { %1142 = vmatprep.mubr.msk.f32.mxu0 %vm245_vm0, %v456_v9  ;;  %1141 = vmatpush3.msra.mxu0 %v207_v5 }
  0xda   : > { %1178 = vmatprep.subr.bf16.mxu0 %v1384_v16 }
  0xdb   : > { %v343_v12 = vpop.trf.xlu0  ;;  %v569_v13 = vpop.trf.xlu1 }
  0xdc   : > { %1137 = vmatprep.mubr.msk.f32.mxu1 %vm245_vm0, %v343_v12  ;;  %1143 = vmatmul.mubr.msk.f32.vlgmr.msra.gmra.mrb[2].mxu0 %vm245_vm0, %v457_v11 }
  0xdd   : > { %1154 = vmatprep.mubr.msk.f32.mxu0 %vm1385_vm1, %v1386_v17 }
  0xdf   : > { %v344_v14 = vpop.trf.xlu0  ;;  %v570_v15 = vpop.trf.xlu1 }
  0xe0   : > { %1138 = vmatmul.mubr.msk.f32.vlgmr.msra.gmra.mrb[0].mxu1 %vm245_vm0, %v344_v14 }
  0xe1   : > { %1146 = vmatpush3.msra.mxu1 %v208_v7  ;;  %1147 = vmatprep.mubr.msk.f32.mxu1 %vm245_vm0, %v569_v13 }
  0xe2   : > { %1181 = vmatprep.subr.bf16.mxu1 %v1384_v16 }
  0xe4   : > { %1148 = vmatmul.mubr.msk.f32.vlgmr.msra.gmra.mrb[2].mxu1 %vm245_vm0, %v570_v15 }
  0xe5   : > { %1161 = vmatprep.mubr.msk.f32.mxu1 %vm1385_vm1, %v1386_v17 }
 0x1ab   : > { %v1134_v18 = vpop.f32.mrb[0].mxu0 }
 0x1ac   : > { %v318_v19 = vpop.f32.mrb[1].mxu0 }
 0x1ad   : > { %v1179_v20 = vpack.c.bf16 %v1134_v18, %v318_v19 }
 0x1af   : > { %v1144_v21 = vpop.f32.mrb[2].mxu0  ;;  %1180 = vmatpush3.bf16.msra.mxu0 %v1179_v20 }
 0x1b0   : > { %v544_v22 = vpop.f32.mrb[3].mxu0  ;;  %1184 = vmatprep.subr.bf16.mxu0 %v1384_v16 }
 0x1b1   : > { %v1185_v23 = vpack.c.bf16 %v1144_v21, %v544_v22 }
 0x1b2   : > { %1155 = vmatmul.mubr.msk.f32.vlgmr.msra.gmra.mrb[4].mxu0 %vm666_vm2, %v205_v2 }
 0x1b3   : > { %v1139_v24 = vpop.f32.mrb[0].mxu1  ;;  %1186 = vmatpush3.bf16.msra.mxu0 %v1185_v23  ;;  %1168 = vmatprep.mubr.msk.f32.mxu0 %vm1385_vm1, %v1386_v17 }
 0x1b4   : > { %v431_v25 = vpop.f32.mrb[1].mxu1 }
 0x1b5   : > { %v1182_v26 = vpack.c.bf16 %v1139_v24, %v431_v25 }
 0x1b6   : > { %1169 = vmatmul.mubr.msk.f32.vlgmr.msra.gmra.mrb[6].mxu0 %vm666_vm2, %v207_v5 }
 0x1b7   : > { %v1149_v27 = vpop.f32.mrb[2].mxu1  ;;  %1183 = vmatpush3.bf16.msra.mxu1 %v1182_v26 }
 0x1b8   : > { %v657_v28 = vpop.f32.mrb[3].mxu1  ;;  %1187 = vmatprep.subr.bf16.mxu1 %v1384_v16 }
 0x1b9   : > { %v1188_v29 = vpack.c.bf16 %v1149_v27, %v657_v28 }
 0x1ba   : > { %1162 = vmatmul.mubr.msk.f32.vlgmr.msra.gmra.mrb[4].mxu1 %vm666_vm2, %v206_v6 }
 0x1bb   : > { %1189 = vmatpush3.bf16.msra.mxu1 %v1188_v29  ;;  %1175 = vmatprep.mubr.msk.f32.mxu1 %vm1385_vm1, %v1386_v17 }
 0x1be   : > { %1176 = vmatmul.mubr.msk.f32.vlgmr.msra.gmra.mrb[6].mxu1 %vm666_vm2, %v208_v7 }
 0x285   : > { %v736_v30 = vpop.f32.mrb[4].mxu0 }
 0x286   : > { %959 = vst.msk [vmem:[%s201_s20] sm:$0xff] %vm666_vm2, %v736_v30  ;;  %v1156_v31 = vpop.f32.mrb[5].mxu0 }
 0x289   : > { %v882_v32 = vpop.f32.mrb[6].mxu0 }
 0x28a   : > { %961 = vst.msk [vmem:[%s201_s20 + $0x10] sm:$0xff] %vm666_vm2, %v882_v32  ;;  %v1170_v33 = vpop.f32.mrb[7].mxu0 }
 0x28d   : > { %v809_v34 = vpop.f32.mrb[4].mxu1 }
 0x28e   : > { %960 = vst.msk [vmem:[%s201_s20 + $0x8] sm:$0xff] %vm666_vm2, %v809_v34  ;;  %v1163_v35 = vpop.f32.mrb[5].mxu1 }
 0x291   : > { %v955_v36 = vpop.f32.mrb[6].mxu1 }
 0x292   : > { %962 = vst.msk [vmem:[%s201_s20 + $0x18] sm:$0xff] %vm666_vm2, %v955_v36  ;;  %v1177_v37 = vpop.f32.mrb[7].mxu1 }
 0x293   : > { %1321 = shalt.err (!%p1318_p11)
}
 0x294   : > { %s1322_s7 = scalar_lea.hbm %s1608_s28, 512  ;;  %s1326_s4 = scalar_lea.hbm %s1655_s2, 1024 }
 0x295   : > { %p1323_p3 = scmp.ne.s32.totalorder %s1608_s28, %s1322_s7  ;;  %p1327_p2 = scmp.lt.u32.totalorder %s1608_s28, %s1655_s2 }
 0x296   : > { %p1328_p4 = scmp.lt.u32.totalorder %s1326_s4, %s1322_s7  ;;  %p1330_p13 = scmp.lt.u32.totalorder %s1322_s7, %s1608_s28 }
 0x297   : > { %p1324_p8 = pnand %p1323_p3, %p1665_p1 }
 0x298   : > { %p1329_p6 = por %p1328_p4, %p1327_p2 }
 0x299   : > { %p1325_p0 = pneg %p1324_p8 }
 0x29a   : > { %p1331_p12 = por %p1330_p13, %p1329_p6 }
 0x29c   : > { %p1332_p10 = pnand %p1331_p12, %p1325_p0 }
 0x29e   : > { %1335 = shalt.err (!%p1332_p10)
}
 0x29f   : > { %s1388_s23 = smov 128   ;;  %s1389_s29 = smov 8  }
 0x2a0   : > { %1194 = dma.vmem_to_hbm [thread:$0]  (%p1665_p1), %s1602_s5, 512, %s1608_s28, %s964_s24, %s1388_s23, %s1388_s23, %s1389_s29  }
 0x2a1 PF: > { %s992_s20 = sand.u32 1, %s1366_s9   ;;  %p1666_p5 = scmp.ne.s32.totalorder %s1661_s22, 0 }
 0x2a2   : > { %p1667_p7 = scmp.ge.s32.totalorder %s1378_s12, 2  ;;  %s993_s6 = scalar_lea.sflag [#allocation4], %s992_s20 }
 0x2a4   : > { %p1204_p9 = pnand %p1667_p7, %p1666_p5 }
 0x2a6   : > { %1361 = dma.done.wait (!%p1204_p9), %s993_s6, 512  }
 0x2a7   : > { %1363 = vsyncadd (!%p1204_p9), %s993_s6, 4294966784  ;;  %p18_p11 = scmp.ge.s32.totalorder %s1430_s15, 4   ;;  %s1668_s9 = smov %s1370_s10 }
 0x2a8   : > { %s1669_s10 = smov %s1374_s11  ;;  %s1670_s11 = smov %s1442_s18 }
 0x2a9   : > { %s1671_s12 = smov %s1430_s15  ;;  %20 = sbr.rel (!%p18_p11) target bundleno = 7 (0x7), region = 86 }
 0x2b0   :  { %998 = vsyncpa [#allocation3], 1 }
 0x2b1   :  { %1000 = vsyncpa [#allocation3 + $0x1], 1 }
 0x2b2   :  { %1001 = vsyncpa [#allocation6], 1 }
 0x2b3   :  { %1003 = vsyncpa [#allocation6 + $0x1], 1 }
 0x2b4   :  { %1004 = vsyncpa [#allocation4], 1 }
 0x2b5   :  { %1006 = vsyncpa [#allocation4 + $0x1], 1 }

</bundles_post_ra>
